<compile_context>
chip_gen: v5e
topology: v5e:2x2
jax: 0.10.0
libtpu: 0.0.40
codegen_flags: <defaults>
</compile_context>

<pallas_src>
import jax
import jax.numpy as jnp
from jax import lax
from jax.experimental import pallas as pl
from jax.experimental.pallas import tpu as pltpu

# ---- synthetic XAPIConfig ---------------------------------------------------
B, S = 2, 8            # batch, sequence length
H = 32                 # model_hidden_dim (encoder hidden size)
HA = 32                # attend_hidden_dim
HC = 32                # compare_hidden_dim   (compare_input_dim = 2*H)
HG = 32                # aggregate_hidden_dim (aggregate_input_dim = 2*HC)
NUM_CLASSES = 4
VOCAB = 64
INIT_STD = 0.02

LANES = 128            # lane-dense width of every operand / intermediate
WB = 128               # rows per zero-padded weight block in the slab
N = B * S              # rows per sentence in the flattened layout
OUT_ROWS = 8           # (8, 128) sublane/lane-dense output tile

# ---- fused-slab row offsets (all multiples of 8 -> aligned, zero-cost views) -
R_AW1 = 0 * WB
R_AW2 = 1 * WB
R_CW1A = 2 * WB
R_CW1B = 3 * WB
R_CW2 = 4 * WB
R_GW1A = 5 * WB
R_GW1B = 6 * WB
R_GW2 = 7 * WB
R_OW = 8 * WB
R_BIAS = 9 * WB                 # 1152
N_BIAS_ROWS = 8                 # 7 bias rows + 1 zero pad
R_X = R_BIAS + N_BIAS_ROWS      # 1160: per-call activations live here
SLAB_ROWS = R_X + 2 * N         # 1192
assert R_BIAS % 8 == 0 and R_X % 8 == 0 and SLAB_ROWS % 8 == 0


# ---------------------------------------------------------------------------
# Pallas kernel: Attend + Compare + Aggregate + final classification Linear
# ---------------------------------------------------------------------------
def deatt_kernel(slab_ref, out_ref, y_scr):
    f32, bf16 = jnp.float32, jnp.bfloat16

    def mm(a, row):
        # a @ slab[row:row+WB]  — bf16 MXU operands, f32 accumulation.
        w = slab_ref[row:row + WB, :].astype(bf16)      # carved at point of use
        return jnp.dot(a.astype(bf16), w, preferred_element_type=f32)

    def mm_aa(a, b):                                    # activation @ activation
        return jnp.dot(a.astype(bf16), b.astype(bf16), preferred_element_type=f32)

    def mm_nt(a, b):                                    # a @ b.T (no transpose copy)
        return lax.dot_general(a.astype(bf16), b.astype(bf16),
                               (((1,), (1,)), ((), ())),
                               preferred_element_type=f32)

    def relu(x):
        return jnp.maximum(x, 0.0)

    def softmax_last(x):                                # exact divide (== F.softmax)
        m = jnp.max(x, axis=-1, keepdims=True)
        p = jnp.exp(x - m)
        return p / jnp.sum(p, axis=-1, keepdims=True)

    bias = slab_ref[R_BIAS:R_BIAS + N_BIAS_ROWS, :]     # one aligned (8,128) load
    ab1, ab2 = bias[0:1, :], bias[1:2, :]
    cb1, cb2 = bias[2:3, :], bias[3:4, :]
    gb1, gb2 = bias[4:5, :], bias[5:6, :]
    ob = bias[6:7, :]

    # rows [0:N) = sentence A, rows [N:2N) = sentence B, lanes >= H are zero
    X = slab_ref[R_X:R_X + 2 * N, :]                    # (2N, 128) f32

    # ---------------- Attend MLP (both sentences in one fused pass) ---------
    h = relu(mm(X, R_AW1) + ab1)
    f = relu(mm(h, R_AW2) + ab2)                        # (2N, 128)

    # ---------------- Attention, unrolled over the B=2 batch ----------------
    for b in range(B):
        a0, b0 = b * S, N + b * S                       # static, 8-aligned offsets
        f1b, f2b = f[a0:a0 + S, :], f[b0:b0 + S, :]     # (S, 128) views
        Ab, Bb = X[a0:a0 + S, :], X[b0:b0 + S, :]
        e = mm_nt(f1b, f2b)                             # (S, S)
        beta = mm_aa(softmax_last(e), Bb)               # (S, 128)
        alpha = mm_aa(softmax_last(e.T), Ab)            # (S, 128)
        # write straight into the (2N,128) scratch — no in-kernel concatenate
        y_scr[a0:a0 + S, :] = beta
        y_scr[b0:b0 + S, :] = alpha

    # ---------------- Compare MLP (fused: [A;B] with [beta;alpha]) ----------
    # cat([x, y], dim=-1) @ W1 == x @ W1[:H] + y @ W1[H:]
    Y = y_scr[...]                                      # (2N, 128)
    hc = relu(mm(X, R_CW1A) + mm(Y, R_CW1B) + cb1)
    V = relu(mm(hc, R_CW2) + cb2)                       # (2N, 128)

    # ---------------- Aggregate ----------------------------------------------
    va = jnp.sum(V[0:N, :].reshape(B, S, LANES), axis=1)        # (B, 128)
    vb = jnp.sum(V[N:2 * N, :].reshape(B, S, LANES), axis=1)    # (B, 128)
    g = relu(mm(va, R_GW1A) + mm(vb, R_GW1B) + gb1)
    g = relu(mm(g, R_GW2) + gb2)                        # (B, 128)

    # ---------------- Output Linear ------------------------------------------
    logits = mm(g, R_OW) + ob                           # (B, 128); cols >= 4 are zero

    # Lane/sublane-dense (8,128) store; wrapper slices [:B, :NUM_CLASSES].
    out_ref[...] = jnp.zeros_like(out_ref)
    out_ref[0:B, :] = logits.astype(out_ref.dtype)


# ---------------------------------------------------------------------------
# Host-side packing: all weights & biases, lane-padded to 128, in one f32 slab
# ---------------------------------------------------------------------------
def pack_weight_slab(p):
    def wblock(wt):
        blk = jnp.zeros((WB, LANES), jnp.float32)
        return blk.at[:wt.shape[0], :wt.shape[1]].set(wt.astype(jnp.float32))

    def brow(bv):
        row = jnp.zeros((1, LANES), jnp.float32)
        return row.at[0, :bv.shape[-1]].set(bv.reshape(-1).astype(jnp.float32))

    blocks = [
        wblock(p['aw1']),            # R_AW1
        wblock(p['aw2']),            # R_AW2
        wblock(p['cw1'][:H]),        # R_CW1A (acts on [A; B])
        wblock(p['cw1'][H:]),        # R_CW1B (acts on [beta; alpha])
        wblock(p['cw2']),            # R_CW2
        wblock(p['gw1'][:HC]),       # R_GW1A (acts on V_A.sum(1))
        wblock(p['gw1'][HC:]),       # R_GW1B (acts on V_B.sum(1))
        wblock(p['gw2']),            # R_GW2
        wblock(p['ow']),             # R_OW
        brow(p['ab1']), brow(p['ab2']),
        brow(p['cb1']), brow(p['cb2']),
        brow(p['gb1']), brow(p['gb2']),
        brow(p['ob']),
        jnp.zeros((1, LANES), jnp.float32),   # pad bias block to 8 rows
    ]
    wslab = jnp.concatenate(blocks, axis=0)
    assert wslab.shape == (R_X, LANES)
    return wslab


def xapi_deatt_pallas(emb1, emb2, weight_slab):
    # Fuse the per-call activations onto the weight slab -> ONE operand, ONE DMA.
    x = jnp.concatenate([emb1.reshape(N, H), emb2.reshape(N, H)],
                        axis=0).astype(jnp.float32)                      # (2N, H)
    xp = jnp.zeros((2 * N, LANES), jnp.float32).at[:, :H].set(x)         # lane-dense
    slab = jnp.concatenate([weight_slab, xp], axis=0)                    # (1192, 128)

    flops = int(
        2 * (2 * N) * LANES * LANES * 2          # attend fc1 + fc2 (fused rows)
        + B * 3 * S * S * LANES * 2              # e, beta, alpha per batch
        + 3 * (2 * N) * LANES * LANES * 2        # compare fc1 (x2) + fc2
        + 3 * B * LANES * LANES * 2              # aggregate fc1 (x2) + fc2
        + B * LANES * LANES * 2)                 # output linear (padded)
    bytes_accessed = int((slab.size + OUT_ROWS * LANES) * 4)
    transcendentals = int(2 * B * S * S)         # softmax exps

    vmem = pl.BlockSpec(memory_space=pltpu.MemorySpace.VMEM)
    out = pl.pallas_call(
        deatt_kernel,
        out_shape=jax.ShapeDtypeStruct((OUT_ROWS, LANES), jnp.float32),
        in_specs=[vmem],
        out_specs=vmem,
        scratch_shapes=[pltpu.VMEM((2 * N, LANES), jnp.float32)],
        cost_estimate=pl.CostEstimate(flops=flops,
                                      transcendentals=transcendentals,
                                      bytes_accessed=bytes_accessed),
    )(slab)
    return out[:B, :NUM_CLASSES]


# ---------------------------------------------------------------------------
# Pure-JAX reference (mirrors the PyTorch forward, eval-mode dropout, f32)
# ---------------------------------------------------------------------------
def _relu(x):
    return jnp.maximum(x, 0.0)


def _softmax_last(x):
    m = jnp.max(x, axis=-1, keepdims=True)
    p = jnp.exp(x - m)
    return p / jnp.sum(p, axis=-1, keepdims=True)


def xapi_deatt_ref(A, Bm, p):
    def mlp(x, w1, b1, w2, b2):
        hh = _relu(x @ w1 + b1)
        return _relu(hh @ w2 + b2)

    f1 = mlp(A, p['aw1'], p['ab1'], p['aw2'], p['ab2'])
    f2 = mlp(Bm, p['aw1'], p['ab1'], p['aw2'], p['ab2'])
    e = jnp.einsum('bqh,bkh->bqk', f1, f2)
    beta = _softmax_last(e) @ Bm
    alpha = _softmax_last(jnp.swapaxes(e, 1, 2)) @ A
    V_A = mlp(jnp.concatenate([A, beta], axis=-1),
              p['cw1'], p['cb1'], p['cw2'], p['cb2'])
    V_B = mlp(jnp.concatenate([Bm, alpha], axis=-1),
              p['cw1'], p['cb1'], p['cw2'], p['cb2'])
    agg_in = jnp.concatenate([V_A.sum(1), V_B.sum(1)], axis=-1)
    out = mlp(agg_in, p['gw1'], p['gb1'], p['gw2'], p['gb2'])
    return out @ p['ow'] + p['ob']


# ---------------------------------------------------------------------------
# Parameter init (deterministic; Linear weights ~ N(0, 0.02), biases = 0)
# ---------------------------------------------------------------------------
def init_params(key):
    ks = jax.random.split(key, 8)
    n = lambda k, shp: (INIT_STD * jax.random.normal(k, shp)).astype(jnp.float32)
    return dict(
        aw1=n(ks[0], (H, HA)),        ab1=jnp.zeros((1, HA), jnp.float32),
        aw2=n(ks[1], (HA, HA)),       ab2=jnp.zeros((1, HA), jnp.float32),
        cw1=n(ks[2], (2 * H, HC)),    cb1=jnp.zeros((1, HC), jnp.float32),
        cw2=n(ks[3], (HC, HC)),       cb2=jnp.zeros((1, HC), jnp.float32),
        gw1=n(ks[4], (2 * HC, HG)),   gb1=jnp.zeros((1, HG), jnp.float32),
        gw2=n(ks[5], (HG, HG)),       gb2=jnp.zeros((1, HG), jnp.float32),
        ow=n(ks[6], (HG, NUM_CLASSES)), ob=jnp.zeros((1, NUM_CLASSES), jnp.float32),
        embed=n(ks[7], (VOCAB, H)) * 50.0,   # stand-in encoder embedding table
    )


def encoder_standin(input_ids, attention_mask, embed_table):
    # TODO(synk): stand-in for the frozen pretrained XLM-RoBERTa encoder.
    emb = embed_table[input_ids]                       # (B, S, H)
    return emb * attention_mask[..., None].astype(emb.dtype)


if __name__ == "__main__":
    key = jax.random.PRNGKey(0)
    kp, k1, k2 = jax.random.split(key, 3)
    params = init_params(kp)
    weight_slab = pack_weight_slab(params)

    inputs = {
        "input_ids_1": jax.random.randint(k1, (B, S), 0, VOCAB),
        "attention_mask_1": jnp.ones((B, S), jnp.int32),
        "input_ids_2": jax.random.randint(k2, (B, S), 0, VOCAB),
        "attention_mask_2": jnp.ones((B, S), jnp.int32),
    }

    # "encoder" (frozen, no_grad in PyTorch) -> last_hidden_state surrogates
    emb1 = encoder_standin(inputs["input_ids_1"], inputs["attention_mask_1"], params["embed"])
    emb2 = encoder_standin(inputs["input_ids_2"], inputs["attention_mask_2"], params["embed"])

    logits = jax.block_until_ready(xapi_deatt_pallas(emb1, emb2, weight_slab))
    logits_ref = xapi_deatt_ref(emb1, emb2, params)

    assert logits.shape == (B, NUM_CLASSES)
    # bf16 MXU operands (f32 accumulation) vs the f32 reference: scale-relative check
    err = float(jnp.max(jnp.abs(logits - logits_ref)))
    scale = float(jnp.max(jnp.abs(logits_ref)))
    assert err <= 0.08 * scale + 1e-6, (err, scale, logits, logits_ref)
    print("KERNEL_OK")
</pallas_src>

<mosaic_0001>
module attributes {stable_mosaic.version = 11 : i64} {
  func.func @deatt_kernel(%arg0: memref<1192x128xf32, #tpu.memory_space<vmem>>, %arg1: memref<8x128xf32, #tpu.memory_space<vmem>>, %arg2: memref<32x128xf32, #tpu.memory_space<vmem>>) attributes {dimension_semantics = [], scalar_prefetch = 0 : i64, scratch_operands = 1 : i64, tpu.core_type = #tpu.core_type<tc>} {
    %c1152 = arith.constant 1152 : index
    %c0 = arith.constant 0 : index
    %0 = vector.load %arg0[%c1152, %c0] : memref<1192x128xf32, #tpu.memory_space<vmem>>, vector<8x128xf32>
    %1 = vector.extract_strided_slice %0 {offsets = [0, 0], sizes = [1, 128], strides = [1, 1]} : vector<8x128xf32> to vector<1x128xf32>
    %2 = vector.extract_strided_slice %0 {offsets = [1, 0], sizes = [1, 128], strides = [1, 1]} : vector<8x128xf32> to vector<1x128xf32>
    %3 = vector.extract_strided_slice %0 {offsets = [2, 0], sizes = [1, 128], strides = [1, 1]} : vector<8x128xf32> to vector<1x128xf32>
    %4 = vector.extract_strided_slice %0 {offsets = [3, 0], sizes = [1, 128], strides = [1, 1]} : vector<8x128xf32> to vector<1x128xf32>
    %5 = vector.extract_strided_slice %0 {offsets = [4, 0], sizes = [1, 128], strides = [1, 1]} : vector<8x128xf32> to vector<1x128xf32>
    %6 = vector.extract_strided_slice %0 {offsets = [5, 0], sizes = [1, 128], strides = [1, 1]} : vector<8x128xf32> to vector<1x128xf32>
    %7 = vector.extract_strided_slice %0 {offsets = [6, 0], sizes = [1, 128], strides = [1, 1]} : vector<8x128xf32> to vector<1x128xf32>
    %c1160 = arith.constant 1160 : index
    %c0_0 = arith.constant 0 : index
    %8 = vector.load %arg0[%c1160, %c0_0] : memref<1192x128xf32, #tpu.memory_space<vmem>>, vector<32x128xf32>
    %c0_1 = arith.constant 0 : index
    %c0_2 = arith.constant 0 : index
    %9 = vector.load %arg0[%c0_1, %c0_2] : memref<1192x128xf32, #tpu.memory_space<vmem>>, vector<128x128xf32>
    %10 = arith.truncf %9 : vector<128x128xf32> to vector<128x128xbf16>
    %11 = arith.truncf %8 : vector<32x128xf32> to vector<32x128xbf16>
    %cst = arith.constant dense<0.000000e+00> : vector<32x128xf32>
    %12 = tpu.matmul %11, %10, %cst {dimension_numbers = #tpu.dot_dimension_numbers<[1], [0], [0], [1], [0, 0, 1, 1], [], []>} : vector<32x128xbf16>, vector<128x128xbf16>, vector<32x128xf32> -> vector<32x128xf32>
    %13 = vector.broadcast %1 : vector<1x128xf32> to vector<32x128xf32>
    %14 = arith.addf %12, %13 : vector<32x128xf32>
    %cst_3 = arith.constant 0.000000e+00 : f32
    %15 = vector.broadcast %cst_3 : f32 to vector<32x128xf32>
    %16 = arith.maximumf %14, %15 : vector<32x128xf32>
    %c128 = arith.constant 128 : index
    %c0_4 = arith.constant 0 : index
    %17 = vector.load %arg0[%c128, %c0_4] : memref<1192x128xf32, #tpu.memory_space<vmem>>, vector<128x128xf32>
    %18 = arith.truncf %17 : vector<128x128xf32> to vector<128x128xbf16>
    %19 = arith.truncf %16 : vector<32x128xf32> to vector<32x128xbf16>
    %cst_5 = arith.constant dense<0.000000e+00> : vector<32x128xf32>
    %20 = tpu.matmul %19, %18, %cst_5 {dimension_numbers = #tpu.dot_dimension_numbers<[1], [0], [0], [1], [0, 0, 1, 1], [], []>} : vector<32x128xbf16>, vector<128x128xbf16>, vector<32x128xf32> -> vector<32x128xf32>
    %21 = vector.broadcast %2 : vector<1x128xf32> to vector<32x128xf32>
    %22 = arith.addf %20, %21 : vector<32x128xf32>
    %cst_6 = arith.constant 0.000000e+00 : f32
    %23 = vector.broadcast %cst_6 : f32 to vector<32x128xf32>
    %24 = arith.maximumf %22, %23 : vector<32x128xf32>
    %25 = vector.extract_strided_slice %24 {offsets = [0, 0], sizes = [8, 128], strides = [1, 1]} : vector<32x128xf32> to vector<8x128xf32>
    %26 = vector.extract_strided_slice %24 {offsets = [16, 0], sizes = [8, 128], strides = [1, 1]} : vector<32x128xf32> to vector<8x128xf32>
    %27 = vector.extract_strided_slice %8 {offsets = [0, 0], sizes = [8, 128], strides = [1, 1]} : vector<32x128xf32> to vector<8x128xf32>
    %28 = vector.extract_strided_slice %8 {offsets = [16, 0], sizes = [8, 128], strides = [1, 1]} : vector<32x128xf32> to vector<8x128xf32>
    %29 = arith.truncf %25 : vector<8x128xf32> to vector<8x128xbf16>
    %30 = arith.truncf %26 : vector<8x128xf32> to vector<8x128xbf16>
    %cst_7 = arith.constant dense<0.000000e+00> : vector<8x8xf32>
    %31 = tpu.matmul %29, %30, %cst_7 {dimension_numbers = #tpu.dot_dimension_numbers<[1], [1], [0], [0], [0, 0, 1, 0], [], []>} : vector<8x128xbf16>, vector<8x128xbf16>, vector<8x8xf32> -> vector<8x8xf32>
    %cst_8 = arith.constant dense<0xFF800000> : vector<8xf32>
    %32 = vector.multi_reduction <maximumf>, %31, %cst_8 [1] : vector<8x8xf32> to vector<8xf32>
    %33 = vector.shape_cast %32 : vector<8xf32> to vector<8x1xf32>
    %34 = vector.broadcast %33 : vector<8x1xf32> to vector<8x8xf32>
    %35 = arith.subf %31, %34 : vector<8x8xf32>
    %36 = math.exp %35 : vector<8x8xf32>
    %cst_9 = arith.constant dense<0.000000e+00> : vector<8xf32>
    %37 = vector.multi_reduction <add>, %36, %cst_9 [1] : vector<8x8xf32> to vector<8xf32>
    %38 = vector.shape_cast %37 : vector<8xf32> to vector<8x1xf32>
    %39 = vector.broadcast %38 : vector<8x1xf32> to vector<8x8xf32>
    %40 = arith.divf %36, %39 : vector<8x8xf32>
    %41 = arith.truncf %40 : vector<8x8xf32> to vector<8x8xbf16>
    %42 = arith.truncf %28 : vector<8x128xf32> to vector<8x128xbf16>
    %cst_10 = arith.constant dense<0.000000e+00> : vector<8x128xf32>
    %43 = tpu.matmul %41, %42, %cst_10 {dimension_numbers = #tpu.dot_dimension_numbers<[1], [0], [0], [1], [0, 0, 1, 1], [], []>} : vector<8x8xbf16>, vector<8x128xbf16>, vector<8x128xf32> -> vector<8x128xf32>
    %44 = tpu.transpose %31, [1, 0] : vector<8x8xf32> -> vector<8x8xf32>
    %cst_11 = arith.constant dense<0xFF800000> : vector<8xf32>
    %45 = vector.multi_reduction <maximumf>, %44, %cst_11 [1] : vector<8x8xf32> to vector<8xf32>
    %46 = vector.shape_cast %45 : vector<8xf32> to vector<8x1xf32>
    %47 = vector.broadcast %46 : vector<8x1xf32> to vector<8x8xf32>
    %48 = arith.subf %44, %47 : vector<8x8xf32>
    %49 = math.exp %48 : vector<8x8xf32>
    %cst_12 = arith.constant dense<0.000000e+00> : vector<8xf32>
    %50 = vector.multi_reduction <add>, %49, %cst_12 [1] : vector<8x8xf32> to vector<8xf32>
    %51 = vector.shape_cast %50 : vector<8xf32> to vector<8x1xf32>
    %52 = vector.broadcast %51 : vector<8x1xf32> to vector<8x8xf32>
    %53 = arith.divf %49, %52 : vector<8x8xf32>
    %54 = arith.truncf %53 : vector<8x8xf32> to vector<8x8xbf16>
    %55 = arith.truncf %27 : vector<8x128xf32> to vector<8x128xbf16>
    %cst_13 = arith.constant dense<0.000000e+00> : vector<8x128xf32>
    %56 = tpu.matmul %54, %55, %cst_13 {dimension_numbers = #tpu.dot_dimension_numbers<[1], [0], [0], [1], [0, 0, 1, 1], [], []>} : vector<8x8xbf16>, vector<8x128xbf16>, vector<8x128xf32> -> vector<8x128xf32>
    %c0_14 = arith.constant 0 : index
    %c0_15 = arith.constant 0 : index
    %57 = vector.load %arg2[%c0_14, %c0_15] : memref<32x128xf32, #tpu.memory_space<vmem>>, vector<8x128xf32>
    tpu.vector_store %arg2[%c0_14, %c0_15], %43 {strides = array<i32>} : memref<32x128xf32, #tpu.memory_space<vmem>>, vector<8x128xf32>,
    %c16 = arith.constant 16 : index
    %c0_16 = arith.constant 0 : index
    %58 = vector.load %arg2[%c16, %c0_16] : memref<32x128xf32, #tpu.memory_space<vmem>>, vector<8x128xf32>
    tpu.vector_store %arg2[%c16, %c0_16], %56 {strides = array<i32>} : memref<32x128xf32, #tpu.memory_space<vmem>>, vector<8x128xf32>,
    %59 = vector.extract_strided_slice %24 {offsets = [8, 0], sizes = [8, 128], strides = [1, 1]} : vector<32x128xf32> to vector<8x128xf32>
    %60 = vector.extract_strided_slice %24 {offsets = [24, 0], sizes = [8, 128], strides = [1, 1]} : vector<32x128xf32> to vector<8x128xf32>
    %61 = vector.extract_strided_slice %8 {offsets = [8, 0], sizes = [8, 128], strides = [1, 1]} : vector<32x128xf32> to vector<8x128xf32>
    %62 = vector.extract_strided_slice %8 {offsets = [24, 0], sizes = [8, 128], strides = [1, 1]} : vector<32x128xf32> to vector<8x128xf32>
    %63 = arith.truncf %59 : vector<8x128xf32> to vector<8x128xbf16>
    %64 = arith.truncf %60 : vector<8x128xf32> to vector<8x128xbf16>
    %cst_17 = arith.constant dense<0.000000e+00> : vector<8x8xf32>
    %65 = tpu.matmul %63, %64, %cst_17 {dimension_numbers = #tpu.dot_dimension_numbers<[1], [1], [0], [0], [0, 0, 1, 0], [], []>} : vector<8x128xbf16>, vector<8x128xbf16>, vector<8x8xf32> -> vector<8x8xf32>
    %cst_18 = arith.constant dense<0xFF800000> : vector<8xf32>
    %66 = vector.multi_reduction <maximumf>, %65, %cst_18 [1] : vector<8x8xf32> to vector<8xf32>
    %67 = vector.shape_cast %66 : vector<8xf32> to vector<8x1xf32>
    %68 = vector.broadcast %67 : vector<8x1xf32> to vector<8x8xf32>
    %69 = arith.subf %65, %68 : vector<8x8xf32>
    %70 = math.exp %69 : vector<8x8xf32>
    %cst_19 = arith.constant dense<0.000000e+00> : vector<8xf32>
    %71 = vector.multi_reduction <add>, %70, %cst_19 [1] : vector<8x8xf32> to vector<8xf32>
    %72 = vector.shape_cast %71 : vector<8xf32> to vector<8x1xf32>
    %73 = vector.broadcast %72 : vector<8x1xf32> to vector<8x8xf32>
    %74 = arith.divf %70, %73 : vector<8x8xf32>
    %75 = arith.truncf %74 : vector<8x8xf32> to vector<8x8xbf16>
    %76 = arith.truncf %62 : vector<8x128xf32> to vector<8x128xbf16>
    %cst_20 = arith.constant dense<0.000000e+00> : vector<8x128xf32>
    %77 = tpu.matmul %75, %76, %cst_20 {dimension_numbers = #tpu.dot_dimension_numbers<[1], [0], [0], [1], [0, 0, 1, 1], [], []>} : vector<8x8xbf16>, vector<8x128xbf16>, vector<8x128xf32> -> vector<8x128xf32>
    %78 = tpu.transpose %65, [1, 0] : vector<8x8xf32> -> vector<8x8xf32>
    %cst_21 = arith.constant dense<0xFF800000> : vector<8xf32>
    %79 = vector.multi_reduction <maximumf>, %78, %cst_21 [1] : vector<8x8xf32> to vector<8xf32>
    %80 = vector.shape_cast %79 : vector<8xf32> to vector<8x1xf32>
    %81 = vector.broadcast %80 : vector<8x1xf32> to vector<8x8xf32>
    %82 = arith.subf %78, %81 : vector<8x8xf32>
    %83 = math.exp %82 : vector<8x8xf32>
    %cst_22 = arith.constant dense<0.000000e+00> : vector<8xf32>
    %84 = vector.multi_reduction <add>, %83, %cst_22 [1] : vector<8x8xf32> to vector<8xf32>
    %85 = vector.shape_cast %84 : vector<8xf32> to vector<8x1xf32>
    %86 = vector.broadcast %85 : vector<8x1xf32> to vector<8x8xf32>
    %87 = arith.divf %83, %86 : vector<8x8xf32>
    %88 = arith.truncf %87 : vector<8x8xf32> to vector<8x8xbf16>
    %89 = arith.truncf %61 : vector<8x128xf32> to vector<8x128xbf16>
    %cst_23 = arith.constant dense<0.000000e+00> : vector<8x128xf32>
    %90 = tpu.matmul %88, %89, %cst_23 {dimension_numbers = #tpu.dot_dimension_numbers<[1], [0], [0], [1], [0, 0, 1, 1], [], []>} : vector<8x8xbf16>, vector<8x128xbf16>, vector<8x128xf32> -> vector<8x128xf32>
    %c8 = arith.constant 8 : index
    %c0_24 = arith.constant 0 : index
    %91 = vector.load %arg2[%c8, %c0_24] : memref<32x128xf32, #tpu.memory_space<vmem>>, vector<8x128xf32>
    tpu.vector_store %arg2[%c8, %c0_24], %77 {strides = array<i32>} : memref<32x128xf32, #tpu.memory_space<vmem>>, vector<8x128xf32>,
    %c24 = arith.constant 24 : index
    %c0_25 = arith.constant 0 : index
    %92 = vector.load %arg2[%c24, %c0_25] : memref<32x128xf32, #tpu.memory_space<vmem>>, vector<8x128xf32>
    tpu.vector_store %arg2[%c24, %c0_25], %90 {strides = array<i32>} : memref<32x128xf32, #tpu.memory_space<vmem>>, vector<8x128xf32>,
    %c0_26 = arith.constant 0 : index
    %c0_27 = arith.constant 0 : index
    %93 = vector.load %arg2[%c0_26, %c0_27] : memref<32x128xf32, #tpu.memory_space<vmem>>, vector<32x128xf32>
    %c256 = arith.constant 256 : index
    %c0_28 = arith.constant 0 : index
    %94 = vector.load %arg0[%c256, %c0_28] : memref<1192x128xf32, #tpu.memory_space<vmem>>, vector<128x128xf32>
    %95 = arith.truncf %94 : vector<128x128xf32> to vector<128x128xbf16>
    %96 = arith.truncf %8 : vector<32x128xf32> to vector<32x128xbf16>
    %cst_29 = arith.constant dense<0.000000e+00> : vector<32x128xf32>
    %97 = tpu.matmul %96, %95, %cst_29 {dimension_numbers = #tpu.dot_dimension_numbers<[1], [0], [0], [1], [0, 0, 1, 1], [], []>} : vector<32x128xbf16>, vector<128x128xbf16>, vector<32x128xf32> -> vector<32x128xf32>
    %c384 = arith.constant 384 : index
    %c0_30 = arith.constant 0 : index
    %98 = vector.load %arg0[%c384, %c0_30] : memref<1192x128xf32, #tpu.memory_space<vmem>>, vector<128x128xf32>
    %99 = arith.truncf %98 : vector<128x128xf32> to vector<128x128xbf16>
    %100 = arith.truncf %93 : vector<32x128xf32> to vector<32x128xbf16>
    %cst_31 = arith.constant dense<0.000000e+00> : vector<32x128xf32>
    %101 = tpu.matmul %100, %99, %cst_31 {dimension_numbers = #tpu.dot_dimension_numbers<[1], [0], [0], [1], [0, 0, 1, 1], [], []>} : vector<32x128xbf16>, vector<128x128xbf16>, vector<32x128xf32> -> vector<32x128xf32>
    %102 = arith.addf %97, %101 : vector<32x128xf32>
    %103 = vector.broadcast %3 : vector<1x128xf32> to vector<32x128xf32>
    %104 = arith.addf %102, %103 : vector<32x128xf32>
    %cst_32 = arith.constant 0.000000e+00 : f32
    %105 = vector.broadcast %cst_32 : f32 to vector<32x128xf32>
    %106 = arith.maximumf %104, %105 : vector<32x128xf32>
    %c512 = arith.constant 512 : index
    %c0_33 = arith.constant 0 : index
    %107 = vector.load %arg0[%c512, %c0_33] : memref<1192x128xf32, #tpu.memory_space<vmem>>, vector<128x128xf32>
    %108 = arith.truncf %107 : vector<128x128xf32> to vector<128x128xbf16>
    %109 = arith.truncf %106 : vector<32x128xf32> to vector<32x128xbf16>
    %cst_34 = arith.constant dense<0.000000e+00> : vector<32x128xf32>
    %110 = tpu.matmul %109, %108, %cst_34 {dimension_numbers = #tpu.dot_dimension_numbers<[1], [0], [0], [1], [0, 0, 1, 1], [], []>} : vector<32x128xbf16>, vector<128x128xbf16>, vector<32x128xf32> -> vector<32x128xf32>
    %111 = vector.broadcast %4 : vector<1x128xf32> to vector<32x128xf32>
    %112 = arith.addf %110, %111 : vector<32x128xf32>
    %cst_35 = arith.constant 0.000000e+00 : f32
    %113 = vector.broadcast %cst_35 : f32 to vector<32x128xf32>
    %114 = arith.maximumf %112, %113 : vector<32x128xf32>
    %115 = vector.extract_strided_slice %114 {offsets = [0, 0], sizes = [16, 128], strides = [1, 1]} : vector<32x128xf32> to vector<16x128xf32>
    %116 = vector.shape_cast %115 : vector<16x128xf32> to vector<2x8x128xf32>
    %cst_36 = arith.constant dense<0.000000e+00> : vector<2x128xf32>
    %117 = vector.multi_reduction <add>, %116, %cst_36 [1] : vector<2x8x128xf32> to vector<2x128xf32>
    %118 = vector.extract_strided_slice %114 {offsets = [16, 0], sizes = [16, 128], strides = [1, 1]} : vector<32x128xf32> to vector<16x128xf32>
    %119 = vector.shape_cast %118 : vector<16x128xf32> to vector<2x8x128xf32>
    %cst_37 = arith.constant dense<0.000000e+00> : vector<2x128xf32>
    %120 = vector.multi_reduction <add>, %119, %cst_37 [1] : vector<2x8x128xf32> to vector<2x128xf32>
    %c640 = arith.constant 640 : index
    %c0_38 = arith.constant 0 : index
    %121 = vector.load %arg0[%c640, %c0_38] : memref<1192x128xf32, #tpu.memory_space<vmem>>, vector<128x128xf32>
    %122 = arith.truncf %121 : vector<128x128xf32> to vector<128x128xbf16>
    %123 = arith.truncf %117 : vector<2x128xf32> to vector<2x128xbf16>
    %cst_39 = arith.constant dense<0.000000e+00> : vector<2x128xf32>
    %124 = tpu.matmul %123, %122, %cst_39 {dimension_numbers = #tpu.dot_dimension_numbers<[1], [0], [0], [1], [0, 0, 1, 1], [], []>} : vector<2x128xbf16>, vector<128x128xbf16>, vector<2x128xf32> -> vector<2x128xf32>
    %c768 = arith.constant 768 : index
    %c0_40 = arith.constant 0 : index
    %125 = vector.load %arg0[%c768, %c0_40] : memref<1192x128xf32, #tpu.memory_space<vmem>>, vector<128x128xf32>
    %126 = arith.truncf %125 : vector<128x128xf32> to vector<128x128xbf16>
    %127 = arith.truncf %120 : vector<2x128xf32> to vector<2x128xbf16>
    %cst_41 = arith.constant dense<0.000000e+00> : vector<2x128xf32>
    %128 = tpu.matmul %127, %126, %cst_41 {dimension_numbers = #tpu.dot_dimension_numbers<[1], [0], [0], [1], [0, 0, 1, 1], [], []>} : vector<2x128xbf16>, vector<128x128xbf16>, vector<2x128xf32> -> vector<2x128xf32>
    %129 = arith.addf %124, %128 : vector<2x128xf32>
    %130 = vector.broadcast %5 : vector<1x128xf32> to vector<2x128xf32>
    %131 = arith.addf %129, %130 : vector<2x128xf32>
    %cst_42 = arith.constant 0.000000e+00 : f32
    %132 = vector.broadcast %cst_42 : f32 to vector<2x128xf32>
    %133 = arith.maximumf %131, %132 : vector<2x128xf32>
    %c896 = arith.constant 896 : index
    %c0_43 = arith.constant 0 : index
    %134 = vector.load %arg0[%c896, %c0_43] : memref<1192x128xf32, #tpu.memory_space<vmem>>, vector<128x128xf32>
    %135 = arith.truncf %134 : vector<128x128xf32> to vector<128x128xbf16>
    %136 = arith.truncf %133 : vector<2x128xf32> to vector<2x128xbf16>
    %cst_44 = arith.constant dense<0.000000e+00> : vector<2x128xf32>
    %137 = tpu.matmul %136, %135, %cst_44 {dimension_numbers = #tpu.dot_dimension_numbers<[1], [0], [0], [1], [0, 0, 1, 1], [], []>} : vector<2x128xbf16>, vector<128x128xbf16>, vector<2x128xf32> -> vector<2x128xf32>
    %138 = vector.broadcast %6 : vector<1x128xf32> to vector<2x128xf32>
    %139 = arith.addf %137, %138 : vector<2x128xf32>
    %cst_45 = arith.constant 0.000000e+00 : f32
    %140 = vector.broadcast %cst_45 : f32 to vector<2x128xf32>
    %141 = arith.maximumf %139, %140 : vector<2x128xf32>
    %c1024 = arith.constant 1024 : index
    %c0_46 = arith.constant 0 : index
    %142 = vector.load %arg0[%c1024, %c0_46] : memref<1192x128xf32, #tpu.memory_space<vmem>>, vector<128x128xf32>
    %143 = arith.truncf %142 : vector<128x128xf32> to vector<128x128xbf16>
    %144 = arith.truncf %141 : vector<2x128xf32> to vector<2x128xbf16>
    %cst_47 = arith.constant dense<0.000000e+00> : vector<2x128xf32>
    %145 = tpu.matmul %144, %143, %cst_47 {dimension_numbers = #tpu.dot_dimension_numbers<[1], [0], [0], [1], [0, 0, 1, 1], [], []>} : vector<2x128xbf16>, vector<128x128xbf16>, vector<2x128xf32> -> vector<2x128xf32>
    %146 = vector.broadcast %7 : vector<1x128xf32> to vector<2x128xf32>
    %147 = arith.addf %145, %146 : vector<2x128xf32>
    %cst_48 = arith.constant 0.000000e+00 : f32
    %148 = vector.broadcast %cst_48 : f32 to vector<8x128xf32>
    %c0_49 = arith.constant 0 : index
    %c0_50 = arith.constant 0 : index
    %149 = vector.load %arg1[%c0_49, %c0_50] : memref<8x128xf32, #tpu.memory_space<vmem>>, vector<8x128xf32>
    tpu.vector_store %arg1[%c0_49, %c0_50], %148 {strides = array<i32>} : memref<8x128xf32, #tpu.memory_space<vmem>>, vector<8x128xf32>,
    %c0_51 = arith.constant 0 : index
    %c0_52 = arith.constant 0 : index
    %150 = vector.load %arg1[%c0_51, %c0_52] : memref<8x128xf32, #tpu.memory_space<vmem>>, vector<2x128xf32>
    tpu.vector_store %arg1[%c0_51, %c0_52], %147 {strides = array<i32>} : memref<8x128xf32, #tpu.memory_space<vmem>>, vector<2x128xf32>,
    return
  }
}

</mosaic_0001>

<bundles_post_ra>
// kernel: tpu_custom_call.1
= control target key start
LH: loop header
LB: loop body
LE: loop exit
PB: predicated region body
PF: predicated region fallthrough
CT: control target
= control target key end

     0   :  { %6 = vsyncpa [#allocation4], 0  ;;  %s941_s0 = inlined_call_operand.hbm [shape: f32[1192,128], index: 0, kind: input, shape index: {}]   ;;  %s942_s1 = inlined_call_operand.hbm [shape: f32[8,128], index: 1, kind: output, shape index: {}]  }
   0x1   :  { %7 = vsyncpa [#allocation5], 0  ;;  %s12_s8 = sshll.u32 %s941_s0, 4  ;;  %s857_s9 = smov [#allocation3]   ;;  %s13_s8 = int_to_ptr.hbm [resolvable:$true] %s12_s8 }
   0x2   :  { %s14_s10 = sshll.u32 %s857_s9, 4  ;;  %s858_s11 = smov 128   ;;  %s15_s10 = int_to_ptr.vmem [resolvable:$true] %s14_s10 }
   0x3   :  { %s859_s12 = smov 8  }
   0x4   :  { %20 = dma.hbm_to_vmem [thread:$0]  %s13_s8, 19072, %s15_s10, [#allocation4], %s858_s11, %s858_s11, %s859_s12  }
   0x5   :  { %853 = dma.done.wait [#allocation4], 19072  }
   0x6   :  { %854 = vsyncadd [#allocation4], 4294948224  ;;  %v45_v0 = vld [vmem:[#allocation3 + $0x70] sm:$0xff]  ;;  %v46_v1 = vld [vmem:[#allocation3 + $0x78] sm:$0xff]  ;;  %vm176_vm0 = vcmask 1043456   ;;  %vm146_vm1 = vcmask 64512  }
   0x7   :  { %v43_v2 = vld [vmem:[#allocation3 + $0x60] sm:$0xff]  ;;  %v54_v3 = vpack.c.bf16 %v46_v1, %v45_v0  ;;  %v44_v4 = vld [vmem:[#allocation3 + $0x68] sm:$0xff]  ;;  %v41_v6 = vld [vmem:[#allocation3 + $0x50] sm:$0xff]  ;;  %s861_s0 = smov [#allocation6]   ;;  %s770_s16 = sshll.u32 %s942_s1, 4  ;;  %s771_s16 = int_to_ptr.hbm [resolvable:$true] %s770_s16 }
   0x8   :  { %v53_v5 = vpack.c.bf16 %v44_v4, %v43_v2  ;;  %v42_v7 = vld [vmem:[#allocation3 + $0x58] sm:$0xff]  ;;  %v39_v9 = vld [vmem:[#allocation3 + $0x40] sm:$0xff]  ;;  %v40_v10 = vld [vmem:[#allocation3 + $0x48] sm:$0xff]  ;;  %s768_s13 = sshll.u32 %s861_s0, 4  ;;  %s769_s13 = int_to_ptr.vmem [resolvable:$true] %s768_s13 }
   0x9   :  { %58 = vmatpush.bf16.msra.mxu0 %v54_v3  ;;  %v52_v8 = vpack.c.bf16 %v42_v7, %v41_v6  ;;  %v51_v11 = vpack.c.bf16 %v40_v10, %v39_v9  ;;  %v37_v12 = vld [vmem:[#allocation3 + $0x30] sm:$0xff]  ;;  %v38_v13 = vld [vmem:[#allocation3 + $0x38] sm:$0xff]  ;;  %v35_v15 = vld [vmem:[#allocation3 + $0x20] sm:$0xff] }
   0xa   :  { %v50_v14 = vpack.c.bf16 %v38_v13, %v37_v12  ;;  %v36_v16 = vld [vmem:[#allocation3 + $0x28] sm:$0xff]  ;;  %v95_v17 = vld [vmem:[#allocation3 + $0xf0] sm:$0xff]  ;;  %v96_v18 = vld [vmem:[#allocation3 + $0xf8] sm:$0xff] }
   0xb   :  { %v93_v19 = vld [vmem:[#allocation3 + $0xe0] sm:$0xff]  ;;  %v49_v20 = vpack.c.bf16 %v36_v16, %v35_v15  ;;  %v104_v21 = vpack.c.bf16 %v96_v18, %v95_v17  ;;  %v94_v22 = vld [vmem:[#allocation3 + $0xe8] sm:$0xff]  ;;  %v33_v23 = vld [vmem:[#allocation3 + $0x10] sm:$0xff] }
   0xc   :  { %v34_v24 = vld [vmem:[#allocation3 + $0x18] sm:$0xff]  ;;  %v103_v25 = vpack.c.bf16 %v94_v22, %v93_v19  ;;  %v91_v26 = vld [vmem:[#allocation3 + $0xd0] sm:$0xff]  ;;  %v31_v29 = vld [vmem:[#allocation3] sm:$0xff] }
   0xd   :  { %59 = vmatpush.bf16.msra.mxu0 %v53_v5  ;;  %108 = vmatpush.bf16.msra.mxu1 %v104_v21  ;;  %v92_v27 = vld [vmem:[#allocation3 + $0xd8] sm:$0xff]  ;;  %v48_v28 = vpack.c.bf16 %v34_v24, %v33_v23  ;;  %v32_v30 = vld [vmem:[#allocation3 + $0x8] sm:$0xff]  ;;  %v89_v32 = vld [vmem:[#allocation3 + $0xc0] sm:$0xff] }
   0xe   :  { %v102_v31 = vpack.c.bf16 %v92_v27, %v91_v26  ;;  %v90_v33 = vld [vmem:[#allocation3 + $0xc8] sm:$0xff]  ;;  %v47_v34 = vpack.c.bf16 %v32_v30, %v31_v29  ;;  %v877_v36 = vld [vmem:[#allocation3 + $0x490] sm:$0xff]  ;;  %v29_v39 = vld [vmem:[#allocation3 + $0x498] sm:$0xff] }
   0xf   :  { %v875_v35 = vld [vmem:[#allocation3 + $0x488] sm:$0xff]  ;;  %v101_v37 = vpack.c.bf16 %v90_v33, %v89_v32  ;;  %v884_v40 = vld [vmem:[#allocation3 + $0x4a0] sm:$0xff]  ;;  %v87_v42 = vld [vmem:[#allocation3 + $0xb0] sm:$0xff]  ;;  %v172_v12 = vpack.c.bf16 %v29_v39, %v29_v39 }
  0x10   :  { %v881_v38 = vpack.c.bf16 %v877_v36, %v875_v35  ;;  %v887_v41 = vpack.c.bf16 %v884_v40, %v29_v39  ;;  %v88_v43 = vld [vmem:[#allocation3 + $0xb8] sm:$0xff]  ;;  %v85_v45 = vld [vmem:[#allocation3 + $0xa0] sm:$0xff]  ;;  %v86_v46 = vld [vmem:[#allocation3 + $0xa8] sm:$0xff] }
  0x11   :  { %60 = vmatpush.bf16.msra.mxu0 %v52_v8  ;;  %109 = vmatpush.bf16.msra.mxu1 %v103_v25  ;;  %v100_v44 = vpack.c.bf16 %v88_v43, %v87_v42  ;;  %v99_v47 = vpack.c.bf16 %v86_v46, %v85_v45  ;;  %v83_v48 = vld [vmem:[#allocation3 + $0x90] sm:$0xff]  ;;  %v84_v49 = vld [vmem:[#allocation3 + $0x98] sm:$0xff]  ;;  %v81_v51 = vld [vmem:[#allocation3 + $0x80] sm:$0xff]  ;;  %v178_v16 = vsel %vm176_vm0, %v172_v12, 0 }
  0x12   :  { %v98_v50 = vpack.c.bf16 %v84_v49, %v83_v48  ;;  %v82_v52 = vld [vmem:[#allocation3 + $0x88] sm:$0xff]  ;;  %v890_v54 = vld [vmem:[#allocation3 + $0x480] sm:$0xff] }
  0x13   :  { %v97_v53 = vpack.c.bf16 %v82_v52, %v81_v51  ;;  %v57_v56 = vperm.slane %v890_v54, 0  ;;  %v107_v7 = vperm.slane %v890_v54, 1 }
  0x15   :  { %61 = vmatpush.bf16.msra.mxu0 %v51_v11  ;;  %110 = vmatpush.bf16.msra.mxu1 %v102_v31 }
  0x19   :  { %62 = vmatpush.bf16.msra.mxu0 %v50_v14  ;;  %111 = vmatpush.bf16.msra.mxu1 %v101_v37 }
  0x1d   :  { %63 = vmatpush.bf16.msra.mxu0 %v49_v20  ;;  %112 = vmatpush.bf16.msra.mxu1 %v100_v44 }
  0x21   :  { %64 = vmatpush.bf16.msra.mxu0 %v48_v28  ;;  %113 = vmatpush.bf16.msra.mxu1 %v99_v47 }
  0x25   :  { %65 = vmatpush.bf16.msra.mxu0 %v47_v34  ;;  %114 = vmatpush.bf16.msra.mxu1 %v98_v50 }
  0x28   :  { %66 = vmatmul.bf16.vlgmr.msra.gmra.mxu0 %v881_v38 }
  0x29   :  { %115 = vmatpush.bf16.msra.mxu1 %v97_v53 }
  0x38   :  { %71 = vmatmul.bf16.gmra.mxu0 %v887_v41 }
  0xa5   :  { %v67_v55 = vpop.f32.mrf.mxu0 }
  0xa6   :  { %v68_v57 = vadd.f32 %v67_v55, %v57_v56 }
  0xa8   :  { %v77_v60 = vmax.f32 %v68_v57, 0.0 }
  0xad   :  { %v69_v58 = vpop.f32.mrf.mxu0 }
  0xae   :  { %v70_v59 = vadd.f32 %v69_v58, %v57_v56 }
  0xb0   :  { %v78_v61 = vmax.f32 %v70_v59, 0.0 }
  0xb2   :  { %v105_v62 = vpack.c.bf16 %v78_v61, %v77_v60 }
  0xb4   :  { %116 = vmatmul.bf16.vlgmr.msra.gmra.mxu1 %v105_v62 }
  0xb5   :  { %v72_v63 = vpop.f32.mrf.mxu0 }
  0xb6   :  { %v73_v0 = vadd.f32 %v72_v63, %v57_v56 }
  0xb8   :  { %v79_v3 = vmax.f32 %v73_v0, 0.0 }
  0xbd   :  { %v74_v1 = vpop.f32.mrf.mxu0 }
  0xbe   :  { %v75_v2 = vadd.f32 %v74_v1, %v57_v56 }
  0xc0   :  { %v80_v4 = vmax.f32 %v75_v2, 0.0 }
  0xc2   :  { %v106_v5 = vpack.c.bf16 %v80_v4, %v79_v3 }
  0xc4   :  { %121 = vmatmul.bf16.gmra.mxu1 %v106_v5 }
 0x131   :  { %v117_v6 = vpop.f32.mrf.mxu1 }
 0x132   :  { %v118_v14 = vadd.f32 %v117_v6, %v107_v7 }
 0x134   :  { %v127_v17 = vmax.f32 %v118_v14, 0.0 }
 0x136   :  { %v131_v21 = vpack.c.bf16 %v127_v17, %v127_v17 }
 0x139   :  { %v119_v8 = vpop.f32.mrf.mxu1 }
 0x13a   :  { %v120_v9 = vadd.f32 %v119_v8, %v107_v7 }
 0x13c   :  { %v128_v49 = vmax.f32 %v120_v9, 0.0 }
 0x13e   :  { %v272_v50 = vpack.c.bf16 %v128_v49, %v128_v49 }
 0x141   :  { %v122_v10 = vpop.f32.mrf.mxu1 }
 0x142   :  { %v123_v11 = vadd.f32 %v122_v10, %v107_v7 }
 0x144   :  { %v129_v13 = vmax.f32 %v123_v11, 0.0 }
 0x146   :  { %v132_v15 = vpack.c.bf16 %v129_v13, %v129_v13 }
 0x148   :  { %140 = vmatpush.bf16.xpose.msra.mxu2 %v132_v15 }
 0x149   :  { %v124_v18 = vpop.f32.mrf.mxu1 }
 0x14a   :  { %v125_v19 = vadd.f32 %v124_v18, %v107_v7  ;;  %v250_v7 = vpack.c.bf16 %v875_v35, %v875_v35 }
 0x14c   :  { %v130_v20 = vmax.f32 %v125_v19, 0.0  ;;  %v255_v8 = vsel %vm176_vm0, %v250_v7, 0  ;;  %v426_v7 = vld [vmem:[#allocation3 + $0x158] sm:$0xff] }
 0x14d   :  { %264 = vmatpush.bf16.msra.mxu3 %v255_v8 }
 0x14e   :  { %v273_v22 = vpack.c.bf16 %v130_v20, %v130_v20 }
 0x14f   :  { %141 = vmatmul.bf16.vlgmr.msra.gmra.mxu2 %v131_v21 }
 0x150   :  { %187 = vmatpush.bf16.msrb.mxu2 %v178_v16 }
 0x154   :  { %281 = vmatpush.bf16.xpose.msra.mxu2 %v273_v22 }
 0x1d2   :  { %v142_v23 = vpop.f32.mrf.mxu2 }
 0x1d3   :  { %193 = vxpose.xlu1.b32.start.end [1/1] (short) (narrow) %v142_v23, 8  ;;  %v147_v24 = vsel %vm146_vm1, %v142_v23, -inf }
 0x1d4   :  { %148 = vmax.xlane.f32.xlu0 %v147_v24 }
 0x1da   :  { %v144_v25 = vpop.f32.mrf.mxu2 }
 0x247   :  { %v149_v26 = vpop.xlane.xlu0 %148 }
 0x248   :  { %v150_v27 = vsub.f32 %v142_v23, %v149_v26  ;;  %v312_v26 = vpack.c.bf16 %v884_v40, %v884_v40 }
 0x24a   :  { %v151_v28 = vmul.f32 1.442695, %v150_v27  ;;  %v317_v27 = vsel %vm176_vm0, %v312_v26, 0 }
 0x24b   :  { %326 = vmatpush.bf16.msrb.mxu3 %v317_v27  ;;  %v443_v27 = vld [vmem:[#allocation3 + $0x1a0] sm:$0xff] }
 0x24c   :  { %789 = vpow2.f32 %v151_v28 }
 0x252   :  { %v790_v29 = vpop.eup %789 }
 0x253   :  { %v153_v30 = vsel %vm146_vm1, %v790_v29, 0.0 }
 0x254   :  { %154 = vadd.xlane.f32.xlu0 %v153_v30 }
 0x277   :  { %v209_v51 = vpop.trf.xlu1 }
 0x278   :  { %v225_v52 = vsel %vm146_vm1, %v209_v51, -inf }
 0x279   :  { %226 = vmax.xlane.f32.xlu1 %v225_v52 }
 0x2c7   :  { %v155_v31 = vpop.xlane.xlu0 %154 }
 0x2c8   :  { %791 = vrcp.f32 %v155_v31  ;;  %v167_v37 = vand.u32 2147483648, %v155_v31  ;;  %v165_v42 = vand.u32 2147483647, %v155_v31  ;;  %vm161_vm3 = vweird.f32 %v155_v31 }
 0x2ca   :  { %v168_v44 = vor.u32 1.1754944e-38, %v167_v37  ;;  %vm166_vm5 = vcmp.eq.f32.partialorder %v165_v42, 8.507059e+37 }
 0x2ce   :  { %v792_v32 = vpop.eup %791 }
 0x2cf   :  { %v157_v33 = vmul.f32 %v792_v32, %v155_v31  ;;  %vm162_vm2 = vweird.f32 %v792_v32 }
 0x2d0   :  { %vm163_vm4 = vmor %vm161_vm3, %vm162_vm2 }
 0x2d1   :  { %v158_v34 = vsub.f32 1.0, %v157_v33 }
 0x2d3   :  { %v159_v39 = vmul.f32 %v792_v32, %v158_v34 }
 0x2d5   :  { %v160_v43 = vadd.f32 %v792_v32, %v159_v39 }
 0x2d7   :  { %v164_v45 = vsel %vm163_vm4, %v792_v32, %v160_v43 }
 0x2d8   :  { %v169_v46 = vsel %vm166_vm5, %v168_v44, %v164_v45  ;;  %v389_v45 = vpack.c.bf16 %v877_v36, %v877_v36 }
 0x2d9   :  { %v170_v47 = vmul.f32 %v790_v29, %v169_v46 }
 0x2da   :  { %v394_v46 = vsel %vm176_vm0, %v389_v45, 0  ;;  %v440_v45 = vld [vmem:[#allocation3 + $0x188] sm:$0xff] }
 0x2db   :  { %v171_v48 = vpack.c.bf16 %v170_v47, %v170_v47 }
 0x2dd   :  { %780 = vmatmul.msk.bf16.vlgmr.msrb.gmra.mxu2 %vm146_vm1, %v171_v48 }
 0x2de   :  { %403 = vmatpush.bf16.msrb.mxu2 %v394_v46  ;;  %v415_v46 = vld [vmem:[#allocation3 + $0x100] sm:$0xff] }
 0x2ec   :  { %v227_v59 = vpop.xlane.xlu1 %226 }
 0x2ed   :  { %282 = vmatmul.bf16.vlgmr.msra.gmra.mxu2 %v272_v50  ;;  %v228_v60 = vsub.f32 %v209_v51, %v227_v59  ;;  %v453_v50 = vld [vmem:[#allocation3 + $0x1f0] sm:$0xff]  ;;  %v454_v51 = vld [vmem:[#allocation3 + $0x1f8] sm:$0xff] }
 0x2ef   :  { %v229_v61 = vmul.f32 1.442695, %v228_v60 }
 0x2f1   :  { %793 = vpow2.f32 %v229_v61  ;;  %v452_v61 = vld [vmem:[#allocation3 + $0x1e8] sm:$0xff] }
 0x2f7   :  { %v794_v0 = vpop.eup %793 }
 0x2f8   :  { %v231_v1 = vsel %vm146_vm1, %v794_v0, 0.0 }
 0x360   :  { %v899_v53 = vpop.f32.mrf.mxu2 }
 0x368   :  { %v191_v55 = vpop.f32.mrf.mxu2 }
 0x369   :  { %v462_v55 = vpack.c.bf16 %v454_v51, %v453_v50 }
 0x36b   :  { %465 = vmatpush.bf16.msrb.mxu0 %v462_v55  ;;  %v526_v55 = vld [vmem:[#allocation3 + $0x270] sm:$0xff] }
 0x370   :  { %v283_v56 = vpop.f32.mrf.mxu2 }
 0x371   :  { %332 = vxpose.xlu2.b32.start.end [1/1] (short) (narrow) %v283_v56, 8  ;;  %v287_v58 = vsel %vm146_vm1, %v283_v56, -inf }
 0x378   :  { %v285_v57 = vpop.f32.mrf.mxu2 }
 0x379   :  { %v430_v57 = vld [vmem:[#allocation3 + $0x178] sm:$0xff] }
 0x3e2   :  { %288 = vmax.xlane.f32.xlu2 %v287_v58  ;;  %v451_v58 = vld [vmem:[#allocation3 + $0x1e0] sm:$0xff] }
 0x40a   :  { %v348_v62 = vpop.trf.xlu2 }
 0x40b   :  { %v364_v63 = vsel %vm146_vm1, %v348_v62, -inf }
 0x40c   :  { %365 = vmax.xlane.f32.xlu0 %v364_v63  ;;  %v428_v63 = vld [vmem:[#allocation3 + $0x168] sm:$0xff] }
 0x414   :  { %232 = vadd.xlane.f32.xlu0 %v231_v1  ;;  %v461_v1 = vpack.c.bf16 %v452_v61, %v451_v58  ;;  %v522_v61 = vld [vmem:[#allocation3 + $0x250] sm:$0xff] }
 0x416   :  { %466 = vmatpush.bf16.msrb.mxu0 %v461_v1 }
 0x455   :  { %v289_v2 = vpop.xlane.xlu2 %288 }
 0x456   :  { %v290_v3 = vsub.f32 %v283_v56, %v289_v2  ;;  %v429_v56 = vld [vmem:[#allocation3 + $0x170] sm:$0xff] }
 0x457   :  { %v438_v60 = vpack.c.bf16 %v430_v57, %v429_v56  ;;  %v527_v56 = vld [vmem:[#allocation3 + $0x278] sm:$0xff]  ;;  %v524_v57 = vld [vmem:[#allocation3 + $0x260] sm:$0xff] }
 0x458   :  { %v291_v4 = vmul.f32 1.442695, %v290_v3  ;;  %v449_v3 = vld [vmem:[#allocation3 + $0x1d0] sm:$0xff]  ;;  %v535_v58 = vpack.c.bf16 %v527_v56, %v526_v55  ;;  %v593_v55 = vld [vmem:[#allocation3 + $0x2b8] sm:$0xff] }
 0x459   :  { %484 = vmatpush.bf16.msrb.mxu1 %v438_v60 }
 0x45a   :  { %795 = vpow2.f32 %v291_v4  ;;  %v450_v4 = vld [vmem:[#allocation3 + $0x1d8] sm:$0xff] }
 0x460   :  { %v796_v5 = vpop.eup %795 }
 0x461   :  { %v293_v6 = vsel %vm146_vm1, %v796_v5, 0.0 }
 0x462   :  { %294 = vadd.xlane.f32.xlu0 %v293_v6  ;;  %v425_v6 = vld [vmem:[#allocation3 + $0x150] sm:$0xff] }
 0x47f   :  { %v366_v9 = vpop.xlane.xlu0 %365 }
 0x480   :  { %v367_v10 = vsub.f32 %v348_v62, %v366_v9  ;;  %v427_v62 = vld [vmem:[#allocation3 + $0x160] sm:$0xff] }
 0x481   :  { %v437_v2 = vpack.c.bf16 %v428_v63, %v427_v62  ;;  %v523_v62 = vld [vmem:[#allocation3 + $0x258] sm:$0xff] }
 0x482   :  { %v368_v11 = vmul.f32 1.442695, %v367_v10  ;;  %v460_v10 = vpack.c.bf16 %v450_v4, %v449_v3  ;;  %v533_v63 = vpack.c.bf16 %v523_v62, %v522_v61  ;;  %v519_v3 = vld [vmem:[#allocation3 + $0x238] sm:$0xff] }
 0x483   :  { %485 = vmatpush.bf16.msrb.mxu1 %v437_v2  ;;  %v518_v2 = vld [vmem:[#allocation3 + $0x230] sm:$0xff]  ;;  %v589_v61 = vld [vmem:[#allocation3 + $0x298] sm:$0xff] }
 0x484   :  { %797 = vpow2.f32 %v368_v11  ;;  %467 = vmatpush.bf16.msrb.mxu0 %v460_v10  ;;  %v531_v4 = vpack.c.bf16 %v519_v3, %v518_v2 }
 0x487   :  { %v233_v12 = vpop.xlane.xlu0 %232 }
 0x488   :  { %799 = vrcp.f32 %v233_v12  ;;  %v245_v18 = vand.u32 2147483648, %v233_v12  ;;  %v243_v19 = vand.u32 2147483647, %v233_v12  ;;  %vm239_vm7 = vweird.f32 %v233_v12 }
 0x48a   :  { %v908_v13 = vpop.eup %797  ;;  %v246_v21 = vor.u32 1.1754944e-38, %v245_v18  ;;  %vm244_vm9 = vcmp.eq.f32.partialorder %v243_v19, 8.507059e+37  ;;  %v424_v18 = vld [vmem:[#allocation3 + $0x148] sm:$0xff] }
 0x48b   :  { %v370_v14 = vsel %vm146_vm1, %v908_v13, 0.0 }
 0x48c   :  { %371 = vadd.xlane.f32.xlu0 %v370_v14  ;;  %v447_v14 = vld [vmem:[#allocation3 + $0x1c0] sm:$0xff] }
 0x48e   :  { %v800_v15 = vpop.eup %799 }
 0x48f   :  { %v235_v16 = vmul.f32 %v800_v15, %v233_v12  ;;  %vm240_vm6 = vweird.f32 %v800_v15  ;;  %v436_v12 = vpack.c.bf16 %v426_v7, %v425_v6  ;;  %v517_v6 = vld [vmem:[#allocation3 + $0x228] sm:$0xff] }
 0x490   :  { %vm241_vm8 = vmor %vm239_vm7, %vm240_vm6 }
 0x491   :  { %v236_v17 = vsub.f32 1.0, %v235_v16  ;;  %486 = vmatpush.bf16.msrb.mxu1 %v436_v12  ;;  %v513_v12 = vld [vmem:[#allocation3 + $0x208] sm:$0xff] }
 0x493   :  { %v237_v35 = vmul.f32 %v800_v15, %v236_v17  ;;  %v423_v17 = vld [vmem:[#allocation3 + $0x140] sm:$0xff] }
 0x495   :  { %v238_v20 = vadd.f32 %v800_v15, %v237_v35 }
 0x497   :  { %v242_v22 = vsel %vm241_vm8, %v800_v15, %v238_v20  ;;  %v448_v15 = vld [vmem:[#allocation3 + $0x1c8] sm:$0xff]  ;;  %v435_v20 = vpack.c.bf16 %v424_v18, %v423_v17  ;;  %v503_v18 = vperm.slane %v890_v54, 2 }
 0x498   :  { %v247_v23 = vsel %vm244_vm9, %v246_v21, %v242_v22  ;;  %v459_v19 = vpack.c.bf16 %v448_v15, %v447_v14  ;;  %v445_v21 = vld [vmem:[#allocation3 + $0x1b0] sm:$0xff]  ;;  %v446_v22 = vld [vmem:[#allocation3 + $0x1b8] sm:$0xff] }
 0x499   :  { %v248_v24 = vmul.f32 %v794_v0, %v247_v23  ;;  %v421_v23 = vld [vmem:[#allocation3 + $0x130] sm:$0xff]  ;;  %487 = vmatpush.bf16.msrb.mxu1 %v435_v20 }
 0x49a   :  { %468 = vmatpush.bf16.msrb.mxu0 %v459_v19 }
 0x49b   :  { %v249_v25 = vpack.c.bf16 %v248_v24, %v248_v24  ;;  %v422_v24 = vld [vmem:[#allocation3 + $0x138] sm:$0xff] }
 0x49c   :  { %v434_v26 = vpack.c.bf16 %v422_v24, %v421_v23 }
 0x49d   :  { %781 = vmatmul.msk.bf16.vlgmr.msra.gmra.mxu3 %vm146_vm1, %v249_v25  ;;  %v458_v25 = vpack.c.bf16 %v446_v22, %v445_v21 }
 0x49e   :  { %488 = vmatpush.bf16.msrb.mxu1 %v434_v26  ;;  %539 = vmatpush.bf16.msra.mxu3 %v535_v58  ;;  %v591_v58 = vld [vmem:[#allocation3 + $0x2a8] sm:$0xff] }
 0x49f   :  { %469 = vmatpush.bf16.msrb.mxu0 %v458_v25 }
 0x4d5   :  { %v295_v28 = vpop.xlane.xlu0 %294 }
 0x4d6   :  { %801 = vrcp.f32 %v295_v28  ;;  %v307_v32 = vand.u32 2147483648, %v295_v28  ;;  %v305_v34 = vand.u32 2147483647, %v295_v28  ;;  %vm301_vm11 = vweird.f32 %v295_v28 }
 0x4d8   :  { %v308_v39 = vor.u32 1.1754944e-38, %v307_v32  ;;  %vm306_vm13 = vcmp.eq.f32.partialorder %v305_v34, 8.507059e+37  ;;  %v441_v32 = vld [vmem:[#allocation3 + $0x190] sm:$0xff] }
 0x4d9   :  { %v417_v34 = vld [vmem:[#allocation3 + $0x110] sm:$0xff] }
 0x4dc   :  { %v802_v29 = vpop.eup %801 }
 0x4dd   :  { %v297_v30 = vmul.f32 %v802_v29, %v295_v28  ;;  %vm302_vm10 = vweird.f32 %v802_v29  ;;  %v444_v28 = vld [vmem:[#allocation3 + $0x1a8] sm:$0xff] }
 0x4de   :  { %vm303_vm12 = vmor %vm301_vm11, %vm302_vm10 }
 0x4df   :  { %v298_v31 = vsub.f32 1.0, %v297_v30  ;;  %v457_v30 = vpack.c.bf16 %v444_v28, %v443_v27 }
 0x4e1   :  { %v299_v33 = vmul.f32 %v802_v29, %v298_v31  ;;  %470 = vmatpush.bf16.msrb.mxu0 %v457_v30 }
 0x4e3   :  { %v300_v37 = vadd.f32 %v802_v29, %v299_v33  ;;  %v442_v33 = vld [vmem:[#allocation3 + $0x198] sm:$0xff] }
 0x4e5   :  { %v304_v42 = vsel %vm303_vm12, %v802_v29, %v300_v37  ;;  %v420_v29 = vld [vmem:[#allocation3 + $0x128] sm:$0xff]  ;;  %v418_v37 = vld [vmem:[#allocation3 + $0x118] sm:$0xff] }
 0x4e6   :  { %v309_v43 = vsel %vm306_vm13, %v308_v39, %v304_v42  ;;  %v456_v39 = vpack.c.bf16 %v442_v33, %v441_v32 }
 0x4e7   :  { %v310_v40 = vmul.f32 %v796_v5, %v309_v43  ;;  %v432_v43 = vpack.c.bf16 %v418_v37, %v417_v34 }
 0x4e8   :  { %471 = vmatpush.bf16.msrb.mxu0 %v456_v39  ;;  %v600_v39 = vld [vmem:[#allocation3 + $0x2f0] sm:$0xff] }
 0x4e9   :  { %v311_v44 = vpack.c.bf16 %v310_v40, %v310_v40 }
 0x4eb   :  { %782 = vmatmul.msk.bf16.vlgmr.msrb.gmra.mxu3 %vm146_vm1, %v311_v44  ;;  %v439_v44 = vld [vmem:[#allocation3 + $0x180] sm:$0xff] }
 0x4ff   :  { %v372_v47 = vpop.xlane.xlu0 %371 }
 0x500   :  { %803 = vrcp.f32 %v372_v47  ;;  %v384_v59 = vand.u32 2147483648, %v372_v47  ;;  %v382_v0 = vand.u32 2147483647, %v372_v47  ;;  %vm378_vm15 = vweird.f32 %v372_v47 }
 0x502   :  { %v385_v8 = vor.u32 1.1754944e-38, %v384_v59  ;;  %vm383_vm2 = vcmp.eq.f32.partialorder %v382_v0, 8.507059e+37  ;;  %v525_v59 = vld [vmem:[#allocation3 + $0x268] sm:$0xff] }
 0x503   :  { %v534_v60 = vpack.c.bf16 %v525_v59, %v524_v57  ;;  %v590_v57 = vld [vmem:[#allocation3 + $0x2a0] sm:$0xff] }
 0x504   :  { %v604_v59 = vpack.c.bf16 %v591_v58, %v590_v57 }
 0x505   :  { %540 = vmatpush.bf16.msra.mxu3 %v534_v60  ;;  %v588_v60 = vld [vmem:[#allocation3 + $0x290] sm:$0xff] }
 0x506   :  { %v804_v48 = vpop.eup %803  ;;  %v603_v62 = vpack.c.bf16 %v589_v61, %v588_v60 }
 0x507   :  { %v374_v49 = vmul.f32 %v804_v48, %v372_v47  ;;  %vm379_vm14 = vweird.f32 %v804_v48  ;;  %v455_v47 = vpack.c.bf16 %v440_v45, %v439_v44  ;;  %v599_v44 = vld [vmem:[#allocation3 + $0x2e8] sm:$0xff] }
 0x508   :  { %vm380_vm0 = vmor %vm378_vm15, %vm379_vm14 }
 0x509   :  { %v375_v52 = vsub.f32 1.0, %v374_v49  ;;  %472 = vmatpush.bf16.msrb.mxu0 %v455_v47  ;;  %541 = vmatpush.bf16.msra.mxu3 %v533_v63  ;;  %v597_v47 = vld [vmem:[#allocation3 + $0x2d8] sm:$0xff]  ;;  %v586_v63 = vld [vmem:[#allocation3 + $0x280] sm:$0xff] }
 0x50b   :  { %v376_v36 = vmul.f32 %v804_v48, %v375_v52 }
 0x50d   :  { %v377_v5 = vadd.f32 %v804_v48, %v376_v36  ;;  %v520_v36 = vld [vmem:[#allocation3 + $0x240] sm:$0xff] }
 0x50f   :  { %v381_v9 = vsel %vm380_vm0, %v804_v48, %v377_v5  ;;  %v416_v48 = vld [vmem:[#allocation3 + $0x108] sm:$0xff]  ;;  %v516_v5 = vld [vmem:[#allocation3 + $0x220] sm:$0xff] }
 0x510   :  { %v386_v11 = vsel %vm383_vm2, %v385_v8, %v381_v9  ;;  %v431_v49 = vpack.c.bf16 %v416_v48, %v415_v46  ;;  %v530_v7 = vpack.c.bf16 %v517_v6, %v516_v5  ;;  %v514_v8 = vld [vmem:[#allocation3 + $0x210] sm:$0xff]  ;;  %v515_v9 = vld [vmem:[#allocation3 + $0x218] sm:$0xff] }
 0x511   :  { %v387_v16 = vmul.f32 %v908_v13, %v386_v11  ;;  %v419_v13 = vld [vmem:[#allocation3 + $0x120] sm:$0xff]  ;;  %v529_v10 = vpack.c.bf16 %v515_v9, %v514_v8  ;;  %v596_v46 = vld [vmem:[#allocation3 + $0x2d0] sm:$0xff]  ;;  %v627_v6 = vld [vmem:[#allocation3 + $0x378] sm:$0xff] }
 0x512   :  { %v433_v31 = vpack.c.bf16 %v420_v29, %v419_v13  ;;  %v512_v11 = vld [vmem:[#allocation3 + $0x200] sm:$0xff]  ;;  %v607_v48 = vpack.c.bf16 %v597_v47, %v596_v46  ;;  %v626_v5 = vld [vmem:[#allocation3 + $0x370] sm:$0xff] }
 0x513   :  { %v388_v35 = vpack.c.bf16 %v387_v16, %v387_v16  ;;  %v528_v14 = vpack.c.bf16 %v513_v12, %v512_v11  ;;  %v635_v9 = vpack.c.bf16 %v627_v6, %v626_v5  ;;  %v624_v12 = vld [vmem:[#allocation3 + $0x360] sm:$0xff] }
 0x514   :  { %489 = vmatpush.bf16.msrb.mxu1 %v433_v31  ;;  %v612_v47 = vld [vmem:[#allocation3 + $0x300] sm:$0xff] }
 0x515   :  { %783 = vmatmul.msk.bf16.vlgmr.msrb.gmra.mxu2 %vm146_vm1, %v388_v35  ;;  %vm642_vm1 = vcmask 1041409  }
 0x516   :  { %646 = vmatpush.bf16.msra.mxu2 %v635_v9  ;;  %v696_v9 = vld [vmem:[#allocation3 + $0x3f0] sm:$0xff] }
 0x518   :  { %490 = vmatpush.bf16.msrb.mxu1 %v432_v43 }
 0x51c   :  { %491 = vmatpush.bf16.msrb.mxu1 %v431_v49  ;;  %v594_v49 = vld [vmem:[#allocation3 + $0x2c0] sm:$0xff] }
 0x51f   :  { %492 = vmatmul.bf16.vlgmr.msrb.gmra.mxu1 %v881_v38  ;;  %v521_v38 = vld [vmem:[#allocation3 + $0x248] sm:$0xff] }
 0x520   :  { %v266_v42 = vpop.f32.mrf.mxu3 }
 0x528   :  { %v268_v40 = vpop.f32.mrf.mxu3 }
 0x529   :  { %v598_v40 = vld [vmem:[#allocation3 + $0x2e0] sm:$0xff] }
 0x52a   :  { %v608_v45 = vpack.c.bf16 %v599_v44, %v598_v40  ;;  %v614_v44 = vld [vmem:[#allocation3 + $0x310] sm:$0xff] }
 0x52f   :  { %497 = vmatmul.bf16.gmra.mxu1 %v887_v41  ;;  %v532_v41 = vpack.c.bf16 %v521_v38, %v520_v36  ;;  %v587_v36 = vld [vmem:[#allocation3 + $0x288] sm:$0xff] }
 0x530   :  { %v602_v38 = vpack.c.bf16 %v587_v36, %v586_v63 }
 0x531   :  { %542 = vmatpush.bf16.msra.mxu3 %v532_v41  ;;  %v927_v41 = vperm.slane %v890_v54, 3 }
 0x535   :  { %543 = vmatpush.bf16.msra.mxu3 %v531_v4 }
 0x539   :  { %544 = vmatpush.bf16.msra.mxu3 %v530_v7 }
 0x53d   :  { %545 = vmatpush.bf16.msra.mxu3 %v529_v10 }
 0x541   :  { %546 = vmatpush.bf16.msra.mxu3 %v528_v14  ;;  %v625_v14 = vld [vmem:[#allocation3 + $0x368] sm:$0xff] }
 0x56e   :  { %v328_v50 = vpop.f32.mrf.mxu3 }
 0x56f   :  { %v463_v51 = vpack.c.bf16 %v328_v50, %v899_v53  ;;  %v595_v50 = vld [vmem:[#allocation3 + $0x2c8] sm:$0xff] }
 0x571   :  { %473 = vmatmul.bf16.vlgmr.msrb.gmra.mxu0 %v463_v51  ;;  %v606_v51 = vpack.c.bf16 %v595_v50, %v594_v49 }
 0x576   :  { %v330_v52 = vpop.f32.mrf.mxu3 }
 0x577   :  { %v592_v52 = vld [vmem:[#allocation3 + $0x2b0] sm:$0xff] }
 0x578   :  { %v605_v56 = vpack.c.bf16 %v593_v55, %v592_v52 }
 0x598   :  { %v405_v0 = vpop.f32.mrf.mxu2 }
 0x599   :  { %v464_v53 = vpack.c.bf16 %v405_v0, %v266_v42  ;;  %v601_v42 = vld [vmem:[#allocation3 + $0x2f8] sm:$0xff] }
 0x59a   :  { %v609_v43 = vpack.c.bf16 %v601_v42, %v600_v39  ;;  %v617_v39 = vld [vmem:[#allocation3 + $0x328] sm:$0xff] }
 0x59b   :  { %478 = vmatmul.bf16.gmra.mxu0 %v464_v53 }
 0x59c   :  { %v493_v15 = vpop.f32.mrf.mxu1  ;;  %666 = vmatpush.bf16.msra.mxu0 %v609_v43 }
 0x5a0   :  { %v407_v1 = vpop.f32.mrf.mxu2  ;;  %667 = vmatpush.bf16.msra.mxu0 %v608_v45  ;;  %v615_v45 = vld [vmem:[#allocation3 + $0x318] sm:$0xff] }
 0x5a1   :  { %v629_v46 = vpack.c.bf16 %v615_v45, %v614_v44  ;;  %v733_v44 = vld [vmem:[#allocation3 + $0x458] sm:$0xff] }
 0x5a4   :  { %v495_v35 = vpop.f32.mrf.mxu1  ;;  %668 = vmatpush.bf16.msra.mxu0 %v607_v48  ;;  %v613_v48 = vld [vmem:[#allocation3 + $0x308] sm:$0xff] }
 0x5a5   :  { %v628_v49 = vpack.c.bf16 %v613_v48, %v612_v47  ;;  %v731_v47 = vld [vmem:[#allocation3 + $0x448] sm:$0xff] }
 0x5a8   :  { %669 = vmatpush.bf16.msra.mxu0 %v606_v51 }
 0x5ac   :  { %v498_v26 = vpop.f32.mrf.mxu1  ;;  %670 = vmatpush.bf16.msra.mxu0 %v605_v56 }
 0x5b0   :  { %671 = vmatpush.bf16.msra.mxu0 %v604_v59 }
 0x5b4   :  { %v500_v13 = vpop.f32.mrf.mxu1  ;;  %672 = vmatpush.bf16.msra.mxu0 %v603_v62 }
 0x5b8   :  { %673 = vmatpush.bf16.msra.mxu0 %v602_v38 }
 0x5ee   :  { %v474_v16 = vpop.f32.mrf.mxu0 }
 0x5ef   :  { %v494_v17 = vadd.f32 %v493_v15, %v474_v16  ;;  %v634_v16 = vpack.c.bf16 %v625_v14, %v624_v12  ;;  %v695_v12 = vld [vmem:[#allocation3 + $0x3e8] sm:$0xff] }
 0x5f1   :  { %v504_v20 = vadd.f32 %v503_v18, %v494_v17  ;;  %647 = vmatpush.bf16.msra.mxu2 %v634_v16  ;;  %v693_v16 = vld [vmem:[#allocation3 + $0x3d8] sm:$0xff] }
 0x5f3   :  { %v508_v23 = vmax.f32 %v504_v20, 0.0 }
 0x5f6   :  { %v476_v19 = vpop.f32.mrf.mxu0 }
 0x5f7   :  { %v496_v21 = vadd.f32 %v495_v35, %v476_v19  ;;  %v622_v35 = vld [vmem:[#allocation3 + $0x350] sm:$0xff]  ;;  %v623_v19 = vld [vmem:[#allocation3 + $0x358] sm:$0xff] }
 0x5f9   :  { %v505_v22 = vadd.f32 %v503_v18, %v496_v21  ;;  %v633_v21 = vpack.c.bf16 %v623_v19, %v622_v35  ;;  %v691_v35 = vld [vmem:[#allocation3 + $0x3c8] sm:$0xff] }
 0x5fb   :  { %v509_v24 = vmax.f32 %v505_v22, 0.0  ;;  %648 = vmatpush.bf16.msra.mxu2 %v633_v21  ;;  %v689_v21 = vld [vmem:[#allocation3 + $0x3b8] sm:$0xff] }
 0x5fd   :  { %v536_v25 = vpack.c.bf16 %v509_v24, %v508_v23  ;;  %v620_v24 = vld [vmem:[#allocation3 + $0x340] sm:$0xff] }
 0x5ff   :  { %547 = vmatmul.bf16.vlgmr.msra.gmra.mxu3 %v536_v25  ;;  %v621_v25 = vld [vmem:[#allocation3 + $0x348] sm:$0xff] }
 0x618   :  { %v479_v27 = vpop.f32.mrf.mxu0 }
 0x619   :  { %v499_v28 = vadd.f32 %v498_v26, %v479_v27  ;;  %v632_v27 = vpack.c.bf16 %v621_v25, %v620_v24  ;;  %v687_v24 = vld [vmem:[#allocation3 + $0x3a8] sm:$0xff] }
 0x61b   :  { %v506_v30 = vadd.f32 %v503_v18, %v499_v28  ;;  %649 = vmatpush.bf16.msra.mxu2 %v632_v27 }
 0x61d   :  { %v510_v33 = vmax.f32 %v506_v30, 0.0  ;;  %v619_v30 = vld [vmem:[#allocation3 + $0x338] sm:$0xff] }
 0x620   :  { %v481_v29 = vpop.f32.mrf.mxu0 }
 0x621   :  { %v501_v31 = vadd.f32 %v500_v13, %v481_v29  ;;  %v618_v29 = vld [vmem:[#allocation3 + $0x330] sm:$0xff] }
 0x623   :  { %v507_v32 = vadd.f32 %v503_v18, %v501_v31 }
 0x625   :  { %v511_v34 = vmax.f32 %v507_v32, 0.0  ;;  %v631_v32 = vpack.c.bf16 %v619_v30, %v618_v29  ;;  %v682_v30 = vld [vmem:[#allocation3 + $0x380] sm:$0xff] }
 0x627   :  { %v537_v37 = vpack.c.bf16 %v511_v34, %v510_v33  ;;  %650 = vmatpush.bf16.msra.mxu2 %v631_v32 }
 0x629   :  { %552 = vmatmul.bf16.gmra.mxu3 %v537_v37  ;;  %v616_v37 = vld [vmem:[#allocation3 + $0x320] sm:$0xff] }
 0x62a   :  { %v630_v43 = vpack.c.bf16 %v617_v39, %v616_v37  ;;  %v734_v37 = vld [vmem:[#allocation3 + $0x460] sm:$0xff] }
 0x62c   :  { %651 = vmatpush.bf16.msra.mxu2 %v630_v43 }
 0x630   :  { %652 = vmatpush.bf16.msra.mxu2 %v629_v46  ;;  %v730_v46 = vld [vmem:[#allocation3 + $0x440] sm:$0xff] }
 0x631   :  { %v742_v48 = vpack.c.bf16 %v731_v47, %v730_v46 }
 0x634   :  { %653 = vmatpush.bf16.msra.mxu2 %v628_v49  ;;  %v728_v49 = vld [vmem:[#allocation3 + $0x430] sm:$0xff] }
 0x682   :  { %v548_v0 = vpop.f32.mrf.mxu3 }
 0x683   :  { %v549_v53 = vadd.f32 %v548_v0, %v927_v41 }
 0x685   :  { %v558_v1 = vmax.f32 %v549_v53, 0.0 }
 0x687   :  { %v562_v2 = vrot.slane %v558_v1, 4 }
 0x689   :  { %v563_v3 = vadd.f32 %v562_v2, %v558_v1 }
 0x68a   :  { %v550_v4 = vpop.f32.mrf.mxu3 }
 0x68b   :  { %v564_v7 = vrot.slane %v563_v3, 2  ;;  %v551_v8 = vadd.f32 %v550_v4, %v927_v41 }
 0x68d   :  { %v565_v10 = vadd.f32 %v564_v7, %v563_v3  ;;  %v559_v11 = vmax.f32 %v551_v8, 0.0 }
 0x68f   :  { %v568_v15 = vrot.slane %v559_v11, 4  ;;  %v566_v17 = vrot.slane %v565_v10, 1 }
 0x691   :  { %v569_v18 = vadd.f32 %v568_v15, %v559_v11  ;;  %v567_v22 = vadd.f32 %v566_v17, %v565_v10  ;;  %v694_v10 = vld [vmem:[#allocation3 + $0x3e0] sm:$0xff]  ;;  %v692_v15 = vld [vmem:[#allocation3 + $0x3d0] sm:$0xff] }
 0x692   :  { %v704_v14 = vpack.c.bf16 %v695_v12, %v694_v10  ;;  %v703_v17 = vpack.c.bf16 %v693_v16, %v692_v15 }
 0x693   :  { %v570_v20 = vrot.slane %v569_v18, 2  ;;  %v610_v28 = vpack.c.bf16 %v567_v22, %v567_v22 }
 0x695   :  { %v571_v23 = vadd.f32 %v570_v20, %v569_v18  ;;  %v661_v33 = vunpack.c.l.b16 %v610_v28  ;;  %v690_v18 = vld [vmem:[#allocation3 + $0x3c0] sm:$0xff]  ;;  %v688_v20 = vld [vmem:[#allocation3 + $0x3b0] sm:$0xff] }
 0x696   :  { %v702_v19 = vpack.c.bf16 %v691_v35, %v690_v18  ;;  %v701_v22 = vpack.c.bf16 %v689_v21, %v688_v20  ;;  %v684_v28 = vld [vmem:[#allocation3 + $0x390] sm:$0xff] }
 0x697   :  { %v572_v26 = vrot.slane %v571_v23, 1 }
 0x699   :  { %v573_v13 = vadd.f32 %v572_v26, %v571_v23  ;;  %v686_v23 = vld [vmem:[#allocation3 + $0x3a0] sm:$0xff] }
 0x69a   :  { %v700_v25 = vpack.c.bf16 %v687_v24, %v686_v23 }
 0x69b   :  { %v611_v31 = vpack.c.bf16 %v573_v13, %v573_v13  ;;  %v685_v13 = vld [vmem:[#allocation3 + $0x398] sm:$0xff] }
 0x69c   :  { %v699_v29 = vpack.c.bf16 %v685_v13, %v684_v28 }
 0x69d   :  { %v662_v34 = vunpack.c.l.b16 %v611_v31  ;;  %v683_v31 = vld [vmem:[#allocation3 + $0x388] sm:$0xff] }
 0x69e   :  { %v698_v32 = vpack.c.bf16 %v683_v31, %v682_v30 }
 0x69f   :  { %v663_v42 = vsel %vm642_vm1, %v662_v34, %v661_v33  ;;  %v736_v33 = vld [vmem:[#allocation3 + $0x470] sm:$0xff]  ;;  %v737_v34 = vld [vmem:[#allocation3 + $0x478] sm:$0xff] }
 0x6a0   :  { %v664_v40 = vpack.c.b16 %v663_v42, %v663_v42  ;;  %v745_v39 = vpack.c.bf16 %v737_v34, %v736_v33  ;;  %v735_v42 = vld [vmem:[#allocation3 + $0x468] sm:$0xff] }
 0x6a1   :  { %v744_v43 = vpack.c.bf16 %v735_v42, %v734_v37 }
 0x6a2   :  { %674 = vmatmul.bf16.vlgmr.msra.gmra.mxu0 %v664_v40  ;;  %748 = vmatpush.bf16.msrb.mxu3 %v745_v39  ;;  %v732_v40 = vld [vmem:[#allocation3 + $0x450] sm:$0xff] }
 0x6a3   :  { %v743_v45 = vpack.c.bf16 %v733_v44, %v732_v40 }
 0x6a6   :  { %749 = vmatpush.bf16.msrb.mxu3 %v744_v43 }
 0x6aa   :  { %750 = vmatpush.bf16.msrb.mxu3 %v743_v45 }
 0x6ac   :  { %v553_v50 = vpop.f32.mrf.mxu3 }
 0x6ad   :  { %v554_v51 = vadd.f32 %v553_v50, %v927_v41  ;;  %v729_v50 = vld [vmem:[#allocation3 + $0x438] sm:$0xff] }
 0x6ae   :  { %751 = vmatpush.bf16.msrb.mxu3 %v742_v48 }
 0x6af   :  { %v560_v52 = vmax.f32 %v554_v51, 0.0  ;;  %v741_v51 = vpack.c.bf16 %v729_v50, %v728_v49 }
 0x6b1   :  { %v574_v55 = vrot.slane %v560_v52, 4 }
 0x6b2   :  { %752 = vmatpush.bf16.msrb.mxu3 %v741_v51 }
 0x6b3   :  { %v575_v56 = vadd.f32 %v574_v55, %v560_v52  ;;  %v726_v52 = vld [vmem:[#allocation3 + $0x420] sm:$0xff]  ;;  %v727_v55 = vld [vmem:[#allocation3 + $0x428] sm:$0xff] }
 0x6b4   :  { %v555_v57 = vpop.f32.mrf.mxu3 }
 0x6b5   :  { %v576_v58 = vrot.slane %v575_v56, 2  ;;  %v556_v59 = vadd.f32 %v555_v57, %v927_v41  ;;  %v697_v41 = vld [vmem:[#allocation3 + $0x3f8] sm:$0xff]  ;;  %v724_v57 = vld [vmem:[#allocation3 + $0x410] sm:$0xff] }
 0x6b6   :  { %v705_v11 = vpack.c.bf16 %v697_v41, %v696_v9  ;;  %v747_v41 = vperm.slane %v890_v54, 6 }
 0x6b7   :  { %v577_v60 = vadd.f32 %v576_v58, %v575_v56  ;;  %v561_v61 = vmax.f32 %v556_v59, 0.0  ;;  %v740_v56 = vpack.c.bf16 %v727_v55, %v726_v52  ;;  %v725_v58 = vld [vmem:[#allocation3 + $0x418] sm:$0xff]  ;;  %v679_v59 = vperm.slane %v890_v54, 4 }
 0x6b8   :  { %708 = vmatpush.bf16.msra.mxu1 %v705_v11 }
 0x6b9   :  { %v580_v62 = vrot.slane %v561_v61, 4  ;;  %v578_v63 = vrot.slane %v577_v60, 1  ;;  %753 = vmatpush.bf16.msrb.mxu3 %v740_v56 }
 0x6bb   :  { %v581_v36 = vadd.f32 %v580_v62, %v561_v61  ;;  %v579_v0 = vadd.f32 %v578_v63, %v577_v60  ;;  %v739_v61 = vpack.c.bf16 %v725_v58, %v724_v57 }
 0x6bc   :  { %709 = vmatpush.bf16.msra.mxu1 %v704_v14 }
 0x6bd   :  { %v582_v38 = vrot.slane %v581_v36, 2  ;;  %v636_v2 = vpack.c.bf16 %v579_v0, %v579_v0  ;;  %754 = vmatpush.bf16.msrb.mxu3 %v739_v61 }
 0x6bf   :  { %v583_v53 = vadd.f32 %v582_v38, %v581_v36  ;;  %v640_v5 = vunpack.c.l.b16 %v636_v2 }
 0x6c0   :  { %710 = vmatpush.bf16.msra.mxu1 %v703_v17 }
 0x6c1   :  { %v584_v1 = vrot.slane %v583_v53, 1 }
 0x6c3   :  { %v585_v3 = vadd.f32 %v584_v1, %v583_v53  ;;  %v722_v53 = vld [vmem:[#allocation3 + $0x400] sm:$0xff]  ;;  %v723_v1 = vld [vmem:[#allocation3 + $0x408] sm:$0xff] }
 0x6c4   :  { %711 = vmatpush.bf16.msra.mxu1 %v702_v19  ;;  %v738_v2 = vpack.c.bf16 %v723_v1, %v722_v53 }
 0x6c5   :  { %v637_v4 = vpack.c.bf16 %v585_v3, %v585_v3  ;;  %v860_v3 = vmov 0.0  }
 0x6c6   :  { %755 = vmatpush.bf16.msrb.mxu3 %v738_v2  ;;  %761 = vst [vmem:[#allocation6] sm:$0xff] %v860_v3 }
 0x6c7   :  { %v641_v6 = vunpack.c.l.b16 %v637_v4  ;;  %v707_v4 = vperm.slane %v890_v54, 5 }
 0x6c8   :  { %712 = vmatpush.bf16.msra.mxu1 %v701_v22 }
 0x6c9   :  { %v643_v7 = vsel %vm642_vm1, %v641_v6, %v640_v5 }
 0x6ca   :  { %v644_v8 = vpack.c.b16 %v643_v7, %v643_v7 }
 0x6cc   :  { %654 = vmatmul.bf16.vlgmr.msra.gmra.mxu2 %v644_v8  ;;  %713 = vmatpush.bf16.msra.mxu1 %v700_v25 }
 0x6d0   :  { %714 = vmatpush.bf16.msra.mxu1 %v699_v29 }
 0x6d4   :  { %715 = vmatpush.bf16.msra.mxu1 %v698_v32 }
 0x71f   :  { %v675_v26 = vpop.f32.mrf.mxu0 }
 0x727   :  { %v677_v27 = vpop.f32.mrf.mxu0 }
 0x74f   :  { %v655_v60 = vpop.f32.mrf.mxu2 }
 0x750   :  { %v676_v62 = vadd.f32 %v675_v26, %v655_v60 }
 0x752   :  { %v680_v63 = vadd.f32 %v679_v59, %v676_v62 }
 0x754   :  { %v681_v36 = vmax.f32 %v680_v63, 0.0 }
 0x756   :  { %v706_v38 = vpack.c.bf16 %v681_v36, %v681_v36 }
 0x757   :  { %v657_v0 = vpop.f32.mrf.mxu2 }
 0x758   :  { %716 = vmatmul.bf16.vlgmr.msra.gmra.mxu1 %v706_v38 }
 0x7d5   :  { %v717_v5 = vpop.f32.mrf.mxu1 }
 0x7d6   :  { %v718_v6 = vadd.f32 %v717_v5, %v707_v4 }
 0x7d8   :  { %v721_v7 = vmax.f32 %v718_v6, 0.0 }
 0x7da   :  { %v746_v8 = vpack.c.bf16 %v721_v7, %v721_v7 }
 0x7dc   :  { %756 = vmatmul.bf16.vlgmr.msrb.gmra.mxu3 %v746_v8 }
 0x7dd   :  { %v719_v9 = vpop.f32.mrf.mxu1 }
 0x85f   :  { %v757_v10 = vpop.f32.mrf.mxu3 }
 0x860   :  { %v758_v11 = vadd.f32 %v757_v10, %v747_v41 }
 0x862   :  { %762 = vst [vmem:[#allocation6] sm:$0x3] %v758_v11 }
 0x863   :  { %773 = dma.vmem_to_hbm [thread:$0]  %s769_s13, 128, %s771_s16, [#allocation5]  }
 0x867   :  { %v759_v12 = vpop.f32.mrf.mxu3 }
 0x868   :  { %855 = dma.done.wait [#allocation5], 128  }
 0x869   :  { %856 = vsyncadd [#allocation5], 4294967168 }
 0x86a   :  { %778 = vsyncpa [#allocation4], 1 }
 0x86b   :  { %779 = vsyncpa [#allocation5], 1 }

</bundles_post_ra>
